<compile_context>
chip_gen: v7x
topology: tpu7x:2x2x1
jax: 0.10.0
libtpu: 0.0.40
codegen_flags: <defaults>
</compile_context>

<pallas_src>
import functools
import math

import jax
import jax.numpy as jnp
from jax.experimental import pallas as pl
from jax.experimental.pallas import tpu as pltpu

_BUDGET = 20 * 1024 * 1024        # target double-buffered working set per grid step
_VMEM_LIMIT = 32 * 1024 * 1024    # explicit scoped-VMEM limit (safe on v5e/v6e/v7x)
_MAX_TM = 4096                    # rows per step beyond which there is no extra gain


def _sublane(dtype):
    # Native sublane multiple per dtype width: f32 -> 8, bf16 -> 16, int8/fp8 -> 32.
    return {4: 8, 2: 16, 1: 32}.get(jnp.dtype(dtype).itemsize, 8)


def _round_up(a, b):
    return -(-a // b) * b


def _compiler_params(sem):
    return pltpu.CompilerParams(dimension_semantics=sem,
                                vmem_limit_bytes=_VMEM_LIMIT)


# ---------------------------------------------------------------------------
# Kernels
# ---------------------------------------------------------------------------

def _glu_fullwidth_kernel(half, x_ref, o_ref):
    # x_ref: (tm, 2*half).  Slice at lane offset `half` (128-aligned on the fast
    # path; unaligned offsets only occur on the correctness fallback).
    o_ref[...] = x_ref[:, :half] * jax.nn.sigmoid(x_ref[:, half:])


def _glu_pair_kernel(a_ref, g_ref, o_ref):
    # Two pre-split tiles of the SAME array (lane- or sublane-aligned halves).
    o_ref[...] = a_ref[...] * jax.nn.sigmoid(g_ref[...])


# ---------------------------------------------------------------------------
# dim == last :  (M, 2*half) -> (M, half)
# ---------------------------------------------------------------------------

def _pick_tm(M, bytes_per_row, sublane):
    """Budget-derived row tile: multiple of the dtype sublane, <= M, >= 2 grid steps."""
    if M <= sublane:
        return M                                            # block == full extent
    tm = max(sublane, (_BUDGET // max(bytes_per_row, 1)) // sublane * sublane)
    tm = min(tm, _MAX_TM)
    tm = min(tm, _round_up(-(-M // 2), sublane))            # >= 2 steps for v7x megacore
    tm = min(tm, _round_up(M, sublane))
    return max(tm, sublane)


def _pick_tn(half, tm, itemsize):
    """Largest multiple of 128 dividing `half` that keeps 6*tm*tn*itemsize in budget."""
    cap = max(128, (_BUDGET // (6 * tm * itemsize)) // 128 * 128)
    tn = max(128, min(cap, half) // 128 * 128)
    while tn > 128 and half % tn != 0:
        tn -= 128
    return tn


def _glu_last_dim(x2d):
    M, two_half = x2d.shape
    half = two_half // 2
    dt = x2d.dtype
    itemsize = jnp.dtype(dt).itemsize
    sublane = _sublane(dt)

    lane_ok = half % 128 == 0
    bytes_per_row = 6 * half * itemsize       # 2 x (input 2*half + output half) bufs

    if lane_ok and bytes_per_row * sublane > _BUDGET:
        # Very wide rows: add a lane-tiling grid axis; two lane-aligned half-width
        # views of the same array (no in-kernel cross-lane slice).
        tm = M if M <= sublane else max(sublane, min(512, (M // sublane) * sublane))
        tn = _pick_tn(half, tm, itemsize)
        n_lane = half // tn
        return pl.pallas_call(
            _glu_pair_kernel,
            out_shape=jax.ShapeDtypeStruct((M, half), dt),
            grid=(pl.cdiv(M, tm), n_lane),
            in_specs=[
                pl.BlockSpec((tm, tn), lambda i, j: (i, j)),
                pl.BlockSpec((tm, tn), lambda i, j: (i, j + n_lane)),
            ],
            out_specs=pl.BlockSpec((tm, tn), lambda i, j: (i, j)),
            compiler_params=_compiler_params(("parallel", "parallel")),
        )(x2d, x2d)

    # Main path (and the non-128-aligned fallback): 1-D grid over rows, one
    # contiguous full-width input block per step, in-kernel slice at `half`.
    tm = _pick_tm(M, bytes_per_row, sublane)
    return pl.pallas_call(
        functools.partial(_glu_fullwidth_kernel, half),
        out_shape=jax.ShapeDtypeStruct((M, half), dt),
        grid=(pl.cdiv(M, tm),),
        in_specs=[pl.BlockSpec((tm, two_half), lambda i: (i, 0))],
        out_specs=pl.BlockSpec((tm, half), lambda i: (i, 0)),
        compiler_params=_compiler_params(("parallel",)),
    )(x2d)


# ---------------------------------------------------------------------------
# dim != last :  (P, 2*half, T) -> (P, half, T), split on the sublane axis
# ---------------------------------------------------------------------------

def _glu_mid(x3d):
    P, two_half, T = x3d.shape
    half = two_half // 2
    dt = x3d.dtype
    itemsize = jnp.dtype(dt).itemsize
    sublane = _sublane(dt)

    tc_cap = max(sublane, _BUDGET // (6 * T * itemsize))
    tc_max = min(tc_cap, half)
    if P == 1 and half >= 2 * sublane:
        tc_max = min(tc_max, half // 2)       # keep >= 2 grid steps (v7x megacore)
    tc_max = max(sublane, (tc_max // sublane) * sublane)
    tc = sublane
    for cand in range(tc_max, 0, -sublane):   # multiple of sublane that divides half
        if half % cand == 0:
            tc = cand
            break
    n_c = half // tc

    return pl.pallas_call(
        _glu_pair_kernel,
        out_shape=jax.ShapeDtypeStruct((P, half, T), dt),
        grid=(P, n_c),
        in_specs=[
            pl.BlockSpec((1, tc, T), lambda p, c: (p, c, 0)),
            pl.BlockSpec((1, tc, T), lambda p, c: (p, c + n_c, 0)),
        ],
        out_specs=pl.BlockSpec((1, tc, T), lambda p, c: (p, c, 0)),
        compiler_params=_compiler_params(("parallel", "parallel")),
    )(x3d, x3d)


# ---------------------------------------------------------------------------
# Public wrapper (matches torch.nn.GLU(dim).forward)
# ---------------------------------------------------------------------------

def glu(x, dim=-1):
    ndim = x.ndim
    dim = dim % ndim
    size = x.shape[dim]
    if size % 2 != 0:
        raise ValueError("GLU dim size must be even")
    half = size // 2
    itemsize = jnp.dtype(x.dtype).itemsize
    sublane = _sublane(x.dtype)

    if dim == ndim - 1:
        lead = x.shape[:-1]
        M = int(math.prod(lead)) if lead else 1
        out = _glu_last_dim(x.reshape(M, size))
        return out.reshape(*lead, half)

    # Split dim is not minor-most (e.g. Conformer's channel GLU, dim=1):
    # keep trailing dims on lanes, split on the sublane axis — no HBM transpose.
    pre = int(math.prod(x.shape[:dim])) if dim > 0 else 1
    post = int(math.prod(x.shape[dim + 1:]))
    if half % sublane == 0 and 6 * sublane * post * itemsize <= _BUDGET:
        out = _glu_mid(x.reshape(pre, size, post))
        return out.reshape(x.shape[:dim] + (half,) + x.shape[dim + 1:])

    # TODO(synk): lane-tile the trailing axis instead of transposing when `post`
    # alone exceeds the VMEM budget; use the transpose fallback for now.
    xm = jnp.moveaxis(x, dim, -1)
    lead = xm.shape[:-1]
    M = int(math.prod(lead)) if lead else 1
    out = _glu_last_dim(xm.reshape(M, size)).reshape(*lead, half)
    return jnp.moveaxis(out, -1, dim)


def glu_ref(x, dim=-1):
    a, g = jnp.split(x, 2, axis=dim)
    return a * jax.nn.sigmoid(g)


# ---------------------------------------------------------------------------
# Demo / self-check
# ---------------------------------------------------------------------------

if __name__ == "__main__":
    key = jax.random.PRNGKey(0)
    k1, k2, k3, k4, k5 = jax.random.split(key, 5)

    # 1) Lane-dense last-dim path (batch=2, seq=8, hidden=2*128).
    x1 = jax.random.normal(k1, (2, 8, 256), jnp.float32)
    y1 = jax.block_until_ready(glu(x1, dim=-1))
    assert y1.shape == (2, 8, 128)
    assert jnp.allclose(y1, glu_ref(x1, dim=-1), atol=1e-6, rtol=1e-6)

    # 2) Channel GLU (Conformer conv module): dim=1, sublane split, no transpose.
    x2 = jax.random.normal(k2, (2, 256, 16), jnp.float32)
    y2 = jax.block_until_ready(glu(x2, dim=1))
    assert y2.shape == (2, 128, 16)
    assert jnp.allclose(y2, glu_ref(x2, dim=1), atol=1e-6, rtol=1e-6)

    # 3) Ragged row count (M=60 not a multiple of the row tile): cdiv + masked tail.
    x3 = jax.random.normal(k3, (3, 20, 256), jnp.float32)
    y3 = jax.block_until_ready(glu(x3, dim=-1))
    assert y3.shape == (3, 20, 128)
    assert jnp.allclose(y3, glu_ref(x3, dim=-1), atol=1e-6, rtol=1e-6)

    # 4) Non-128-aligned half: M-tiled fallback with in-kernel unaligned lane slice.
    x4 = jax.random.normal(k4, (2, 8, 48), jnp.float32)
    y4 = jax.block_until_ready(glu(x4, dim=-1))
    assert y4.shape == (2, 8, 24)
    assert jnp.allclose(y4, glu_ref(x4, dim=-1), atol=1e-6, rtol=1e-6)

    # 5) bf16: dtype-aware (16, 128) sublane tiling.
    x5 = jax.random.normal(k5, (2, 32, 256), jnp.float32).astype(jnp.bfloat16)
    y5 = jax.block_until_ready(glu(x5, dim=-1))
    assert y5.shape == (2, 32, 128)
    assert jnp.allclose(y5.astype(jnp.float32),
                        glu_ref(x5, dim=-1).astype(jnp.float32),
                        atol=5e-2, rtol=5e-2)

    for y in (y1, y2, y3, y4, y5):
        assert bool(jnp.all(jnp.isfinite(y.astype(jnp.float32))))
    print("KERNEL_OK")
</pallas_src>

<mosaic_0001>
module attributes {stable_mosaic.version = 11 : i64} {
  func.func @_glu_fullwidth_kernel(%arg0: i32, %arg1: memref<8x256xf32, #tpu.memory_space<vmem>>, %arg2: memref<8x128xf32, #tpu.memory_space<vmem>>) attributes {dimension_semantics = [#tpu.dimension_semantics<parallel>], iteration_bounds = array<i64: 2>, scalar_prefetch = 0 : i64, scratch_operands = 0 : i64, tpu.core_type = #tpu.core_type<tc>, window_params = [{transform_indices = @transform_0, window_bounds = array<i64: 8, 256>}, {transform_indices = @transform_1, window_bounds = array<i64: 8, 128>}]} {
    %c0 = arith.constant 0 : index
    %c0_0 = arith.constant 0 : index
    %0 = vector.load %arg1[%c0, %c0_0] : memref<8x256xf32, #tpu.memory_space<vmem>>, vector<8x128xf32>
    %c0_1 = arith.constant 0 : index
    %c128 = arith.constant 128 : index
    %1 = vector.load %arg1[%c0_1, %c128] : memref<8x256xf32, #tpu.memory_space<vmem>>, vector<8x128xf32>
    %2 = arith.negf %1 : vector<8x128xf32>
    %3 = math.exp %2 : vector<8x128xf32>
    %cst = arith.constant 1.000000e+00 : f32
    %4 = vector.broadcast %cst : f32 to vector<8x128xf32>
    %5 = arith.addf %4, %3 : vector<8x128xf32>
    %6 = arith.divf %4, %5 : vector<8x128xf32>
    %7 = arith.mulf %0, %6 : vector<8x128xf32>
    %c0_2 = arith.constant 0 : index
    %c0_3 = arith.constant 0 : index
    %8 = vector.load %arg2[%c0_2, %c0_3] : memref<8x128xf32, #tpu.memory_space<vmem>>, vector<8x128xf32>
    tpu.vector_store %arg2[%c0_2, %c0_3], %7 {strides = array<i32>} : memref<8x128xf32, #tpu.memory_space<vmem>>, vector<8x128xf32>,
    return
  }
  func.func @transform_0(%arg0: i32) -> (i32, i32) {
    %c0_i32 = arith.constant 0 : i32
    %c0_i32_0 = arith.constant 0 : i32
    return %arg0, %c0_i32 : i32, i32
  }
  func.func @transform_1(%arg0: i32) -> (i32, i32) {
    %c0_i32 = arith.constant 0 : i32
    %c0_i32_0 = arith.constant 0 : i32
    return %arg0, %c0_i32 : i32, i32
  }
}

</mosaic_0001>

<bundles_post_ra>
// kernel: tpu_custom_call.1
= control target key start
LH: loop header
LB: loop body
LE: loop exit
PB: predicated region body
PF: predicated region fallthrough
CT: control target
= control target key end

     0   :  { %6 = vsyncpa [#allocation3], 0  ;;  %s564_s0 = inlined_call_operand.hbm [shape: f32[16,256], index: 0, kind: input, shape index: {}]   ;;  %s565_s1 = inlined_call_operand.hbm [shape: f32[16,128], index: 1, kind: output, shape index: {}]  }
   0x1   :  { %8 = vsyncpa [#allocation3 + $0x1], 0 }
   0x2   :  { %9 = vsyncpa [#allocation4], 0 }
   0x3   :  { %11 = vsyncpa [#allocation4 + $0x1], 0  ;;  %s402_s6 = smov 0   ;;  %s404_s7 = smov 0  }
   0x4   :  { %s406_s8 = smov 0   ;;  %s408_s9 = smov 0  }
   0x5 LB: > { %s423_s10 = sadd.s32 4294967295, %s388_s9   ;;  %s227_s11 = sadd.s32 4294967294, %s388_s9   ;;  %s388_s9 = sphi %s408_s9, %s580_s9   ;;  %s384_s8 = sphi %s406_s8, %s579_s8   ;;  %s380_s7 = sphi %s404_s7, %s578_s7   ;;  %s376_s6 = sphi %s402_s6, %s577_s6  }
   0x6   : > { %s427_s12 = sadd.s32 1, %s388_s9   ;;  %s24_s13 = sadd.s32 1, %s384_s8 }
   0x7   : > { %s21_s14 = ssub.s32 %s388_s9, %s427_s12  ;;  %p31_p0 = scmp.ne.s32.totalorder %s384_s8, %s380_s7 }
   0x8   : > { %p22_p1 = scmp.eq.s32.totalorder %s21_s14, 0  ;;  %p32_p2 = scmp.eq.s32.totalorder %s388_s9, 0 }
   0x9   : > { %p37_p3 = scmp.ne.s32.totalorder %s380_s7, %s376_s6  ;;  %p38_p4 = scmp.eq.s32.totalorder %s423_s10, 0 }
   0xa   : > { %s439_s15 = scalar_select %p22_p1, %s384_s8, %s24_s13  }
   0xb   : > { %p441_p5 = por %p32_p2, %p31_p0  ;;  %p445_p6 = por %p38_p4, %p37_p3 }
   0xc   : > { %p61_p7 = scmp.eq.s32.totalorder %s423_s10, 1  ;;  %p67_p8 = scmp.eq.s32.totalorder %s227_s11, 1 }
   0xd   : > { %p254_p10 = scmp.lt.s32.totalorder %s388_s9, 2  ;;  %s87_s20 = sand.u32 1, %s384_s8  }
   0xe   : > { %p452_p11 = por %p61_p7, %p31_p0  ;;  %p456_p12 = por %p67_p8, %p37_p3 }
   0xf   : > { %s241_s21 = sshll.u32 %s388_s9, 8  ;;  %s230_s22 = sshll.u32 %s87_s20, 4 }
  0x10   : > { %s569_s18 = scalar_select %p452_p11, 1, 0 }
  0x11   : > { %s570_s19 = scalar_select %p456_p12, 1, 0 }
  0x12   : > { %s465_s25 = scalar_lea.hbm %s564_s0, %s241_s21  ;;  %s91_s26 = scalar_lea.vmem [#allocation2], %s230_s22 }
  0x13   : > { %s99_s27 = sshll.u32 %s91_s26, 4  ;;  %p469_p13 = pnand %p254_p10, %p441_p5  ;;  %s473_s27 = int_to_ptr.vmem [resolvable:$true] %s99_s27 }
  0x14   : > { %s88_s29 = scalar_lea.sflag [#allocation3], %s87_s20  ;;  %s292_s30 = scalar_lea.hbm %s465_s25, 256 }
  0x15   : > { %p293_p2 = scmp.ne.s32.totalorder %s465_s25, %s292_s30  ;;  %p294_p3 = pneg %p469_p13 }
  0x16   : > { %s297_s4 = scalar_lea.hbm %s564_s0, 512  ;;  %p298_p5 = scmp.lt.u32.totalorder %s465_s25, %s564_s0 }
  0x17   : > { %p295_p4 = pnand %p294_p3, %p293_p2  ;;  %p299_p8 = scmp.lt.u32.totalorder %s297_s4, %s292_s30 }
  0x18   : > { %p301_p9 = scmp.lt.u32.totalorder %s292_s30, %s465_s25 }
  0x19   : > { %p296_p7 = pneg %p295_p4  ;;  %p300_p10 = por %p299_p8, %p298_p5 }
  0x1b   : > { %p302_p0 = por %p301_p9, %p300_p10 }
  0x1d   : > { %p303_p1 = pnand %p302_p0, %p296_p7 }
  0x1f   : > { %306 = shalt.err (!%p303_p1)
}
  0x20   : > { %s307_s13 = scalar_lea.vmem %s473_s27, 256  ;;  %s390_s14 = smov [#allocation2]  }
  0x21   : > { %p308_p2 = scmp.ne.s32.totalorder %s473_s27, %s307_s13  ;;  %s312_s16 = sshll.u32 %s390_s14, 4  ;;  %s313_s16 = int_to_ptr.vmem [resolvable:$false] %s312_s16 }
  0x22   : > { %s314_s20 = scalar_lea.vmem %s313_s16, 512  ;;  %p315_p11 = scmp.lt.s32.totalorder %s473_s27, %s313_s16 }
  0x23   : > { %p310_p4 = pnand %p308_p2, %p294_p3  ;;  %p316_p5 = scmp.lt.s32.totalorder %s314_s20, %s307_s13 }
  0x25   : > { %p311_p12 = pneg %p310_p4  ;;  %p317_p8 = por %p316_p5, %p315_p11 }
  0x27   : > { %p318_p9 = pnand %p317_p8, %p311_p12 }
  0x29   : > { %321 = shalt.err (!%p318_p9)
}
  0x2a   : > { %249 = dma.hbm_to_vmem [thread:$0]  (!%p469_p13), %s465_s25, 256, %s473_s27, %s88_s29  }
  0x2b   : > { %p572_p0 = scmp.lt.s32.totalorder %s388_s9, 3  ;;  %p573_p1 = scmp.ge.s32.totalorder %s388_s9, 1 }
  0x2d   : > { %p105_p3 = pnand %p573_p1, %p572_p0 }
  0x2e   : > { %s507_s21 = sand.u32 (!%p105_p3), 1, %s380_s7  }
  0x2f   : > { %108 = sbr.rel (%p105_p3) target bundleno = 98 (0x62), region = 24  ;;  %s234_s22 = sshll.u32 (!%p105_p3), %s507_s21, 4 }
  0x30   : > { %s111_s23 = scalar_lea.sflag (!%p105_p3), [#allocation3], %s507_s21  ;;  %s114_s24 = scalar_lea.vmem (!%p105_p3), [#allocation2], %s234_s22 }
  0x36   : > { %367 = dma.done.wait (%p445_p6), %s111_s23, 256  }
  0x37   : > { %369 = vsyncadd (%p445_p6), %s111_s23, 4294967040  ;;  %v134_v0 = vld [vmem:[%s114_s24 + $0x8] sm:$0xff]  ;;  %s235_s25 = sshll.u32 %s507_s21, 3  ;;  %v133_v4 = vld [vmem:[%s114_s24] sm:$0xff]  ;;  %s238_s28 = sshll.u32 %s423_s10, 7 }
  0x38   : > { %v236_v1 = vmul.f32 -1.442695, %v134_v0  ;;  %s132_s26 = scalar_lea.vmem [#allocation5], %s235_s25  ;;  %s522_s30 = scalar_lea.hbm %s565_s1, %s238_s28 }
  0x39   : > { %s157_s27 = sshll.u32 %s132_s26, 4  ;;  %s144_s2 = scalar_lea.sflag [#allocation4], %s507_s21  ;;  %s517_s27 = int_to_ptr.vmem [resolvable:$true] %s157_s27 }
  0x3a   : > { %288 = vpow2.f32 %v236_v1  ;;  %s322_s3 = scalar_lea.vmem %s517_s27, 128  ;;  %p574_p11 = scmp.ne.s32.totalorder %s569_s18, 0 }
  0x3b   : > { %p323_p6 = scmp.ne.s32.totalorder %s517_s27, %s322_s3  ;;  %s391_s10 = smov [#allocation5]  }
  0x3c   : > { %s326_s4 = sshll.u32 %s391_s10, 4  ;;  %s327_s4 = int_to_ptr.vmem [resolvable:$false] %s326_s4 }
  0x3d   : > { %p324_p12 = pnand %p323_p6, %p574_p11  ;;  %s328_s5 = scalar_lea.vmem %s327_s4, 256 }
  0x3e   : > { %p329_p7 = scmp.lt.s32.totalorder %s517_s27, %s327_s4  ;;  %p330_p10 = scmp.lt.s32.totalorder %s328_s5, %s322_s3 }
  0x3f   : > { %p325_p13 = pneg %p324_p12 }
  0x40   : > { %p331_p2 = por %p330_p10, %p329_p7 }
  0x42   : > { %p332_p4 = pnand %p331_p2, %p325_p13 }
  0x44   : > { %v289_v2 = vpop.eup %288 }
  0x45   : > { %v138_v3 = vadd.f32 1.0, %v289_v2 }
  0x47   : > { %290 = vrcp.f32 %v138_v3 }
  0x51   : > { %v291_v5 = vpop.eup %290 }
  0x52   : > { %v141_v6 = vmul.f32 %v291_v5, %v133_v4 }
  0x54   : > { %142 = vst [vmem:[%s132_s26] sm:$0xff] %v141_v6 }
  0x55   : > { %335 = shalt.err (!%p332_p4)
}
  0x56   : > { %s336_s11 = scalar_lea.hbm %s522_s30, 128  ;;  %s340_s16 = scalar_lea.hbm %s565_s1, 256 }
  0x57   : > { %p337_p5 = scmp.ne.s32.totalorder %s522_s30, %s336_s11  ;;  %p341_p0 = scmp.lt.u32.totalorder %s522_s30, %s565_s1 }
  0x58   : > { %p342_p1 = scmp.lt.u32.totalorder %s340_s16, %s336_s11  ;;  %p344_p6 = scmp.lt.u32.totalorder %s336_s11, %s522_s30 }
  0x59   : > { %p338_p8 = pnand %p337_p5, %p574_p11 }
  0x5a   : > { %p343_p3 = por %p342_p1, %p341_p0 }
  0x5b   : > { %p339_p9 = pneg %p338_p8 }
  0x5c   : > { %p345_p12 = por %p344_p6, %p343_p3 }
  0x5e   : > { %p346_p13 = pnand %p345_p12, %p339_p9 }
  0x60   : > { %349 = shalt.err (!%p346_p13)
}
  0x61   : > { %244 = dma.vmem_to_hbm [thread:$0]  (%p574_p11), %s517_s27, 128, %s522_s30, %s144_s2  }
  0x62 PF: > { %s169_s22 = sand.u32 1, %s376_s6   ;;  %p575_p7 = scmp.ne.s32.totalorder %s570_s19, 0 }
  0x63   : > { %p576_p10 = scmp.ge.s32.totalorder %s388_s9, 2  ;;  %s170_s23 = scalar_lea.sflag [#allocation4], %s169_s22 }
  0x65   : > { %p251_p2 = pnand %p576_p10, %p575_p7 }
  0x67   : > { %371 = dma.done.wait (!%p251_p2), %s170_s23, 128  }
  0x68   : > { %373 = vsyncadd (!%p251_p2), %s170_s23, 4294967168  ;;  %p14_p4 = scmp.ge.s32.totalorder %s427_s12, 4   ;;  %s577_s6 = smov %s380_s7 }
  0x69   : > { %s578_s7 = smov %s384_s8  ;;  %s579_s8 = smov %s439_s15 }
  0x6a   : > { %s580_s9 = smov %s427_s12  ;;  %16 = sbr.rel (!%p14_p4) target bundleno = 5 (0x5), region = 69 }
  0x71   :  { %175 = vsyncpa [#allocation3], 1 }
  0x72   :  { %177 = vsyncpa [#allocation3 + $0x1], 1 }
  0x73   :  { %178 = vsyncpa [#allocation4], 1 }
  0x74   :  { %180 = vsyncpa [#allocation4 + $0x1], 1 }

</bundles_post_ra>
